<compile_context>
chip_gen: v6e
topology: v6e:2x2x1
jax: 0.10.0
libtpu: 0.0.40
codegen_flags: <defaults>
</compile_context>

<pallas_src>
import functools
import math

import jax
import jax.numpy as jnp
from jax.experimental import pallas as pl
from jax.experimental.pallas import tpu as pltpu

# ----------------------------------------------------------------- knobs
MXU_DTYPE = jnp.bfloat16      # MXU-native on v5e/v6e/v7x
ACT_DTYPE = jnp.bfloat16      # inter-kernel activation slabs (halves HBM DMA)
# All accumulators / softmax stats / LayerNorm stats stay f32 (v5e has no bf16
# VPU/EUP; f32 epilogues are required there and cheap everywhere).


def _chip_config():
    """Per-generation VMEM budget + matmul tiles.

    v5e/v6e have 128 MiB physical VMEM -> 64 MiB scoped limit and 512-wide
    tiles (~85% of HBM roofline); v7x has only 64 MiB -> keep 32 MiB / 256.
    """
    try:
        vmem_cap = pltpu.get_tpu_info().vmem_capacity_bytes
    except Exception:                       # conservative fallback
        vmem_cap = 64 * 1024 * 1024
    if vmem_cap >= 100 * 1024 * 1024:       # v5e / v6e
        return 64 * 1024 * 1024, 512, 512, 512
    return 32 * 1024 * 1024, 256, 256, 512  # v7x


VMEM_LIMIT_BYTES, TILE_M, TILE_N, TILE_K = _chip_config()


def _round_up(x, m):
    return (x + m - 1) // m * m


def _pick_tile(dim, desired, align=128):
    """Largest aligned tile that divides `dim`, capped at `desired`."""
    if dim <= desired:
        return dim
    if dim % desired == 0:
        return desired
    start = desired - desired % align
    for cand in range(start, align - 1, -align):
        if cand > 0 and dim % cand == 0:
            return cand
    # TODO(synk): pad ragged dims to the next tile multiple instead of
    # collapsing the axis into a single (possibly VMEM-busting) block.
    return dim


# ----------------------------------------------------------------- kernels

def _linear_kernel(x_ref, w_ref, b_ref, o_ref, acc_ref, *, activation):
    """Tiled matmul with K-reduction grid; bias (+ReLU) fused in the epilogue."""
    @pl.when(pl.program_id(2) == 0)
    def _():
        acc_ref[...] = jnp.zeros_like(acc_ref)

    acc_ref[...] += jnp.dot(x_ref[...].astype(MXU_DTYPE),
                            w_ref[...].astype(MXU_DTYPE),
                            preferred_element_type=jnp.float32)

    @pl.when(pl.program_id(2) == pl.num_programs(2) - 1)
    def _():
        acc = acc_ref[...] + b_ref[...]
        if activation == "relu":
            acc = jnp.maximum(acc, 0.0)
        o_ref[...] = acc.astype(o_ref.dtype)


def pallas_linear(x2d, w, b, activation=None, out_dtype=jnp.float32):
    M, K = x2d.shape
    N = w.shape[1]
    tm = _pick_tile(M, TILE_M, align=8)
    tn = _pick_tile(N, TILE_N, align=128)
    tk = _pick_tile(K, TILE_K, align=128)
    kernel = functools.partial(_linear_kernel, activation=activation)
    return pl.pallas_call(
        kernel,
        out_shape=jax.ShapeDtypeStruct((M, N), out_dtype),
        grid=(M // tm, N // tn, K // tk),
        in_specs=[
            pl.BlockSpec((tm, tk), lambda i, j, k: (i, k)),
            pl.BlockSpec((tk, tn), lambda i, j, k: (k, j)),
            pl.BlockSpec((1, tn), lambda i, j, k: (0, j)),
        ],
        out_specs=pl.BlockSpec((tm, tn), lambda i, j, k: (i, j)),
        scratch_shapes=[pltpu.VMEM((tm, tn), jnp.float32)],
        compiler_params=pltpu.CompilerParams(
            dimension_semantics=("parallel", "parallel", "arbitrary"),
            vmem_limit_bytes=VMEM_LIMIT_BYTES),
    )(x2d, w, b.reshape(1, N))


def _linear_res_ln_kernel(x_ref, w_ref, b_ref, r_ref, g_ref, bb_ref, o_ref,
                          acc_ref, *, eps):
    """Matmul (K-reduction grid) with bias + residual + LayerNorm epilogue."""
    @pl.when(pl.program_id(1) == 0)
    def _():
        acc_ref[...] = jnp.zeros_like(acc_ref)

    acc_ref[...] += jnp.dot(x_ref[...].astype(MXU_DTYPE),
                            w_ref[...].astype(MXU_DTYPE),
                            preferred_element_type=jnp.float32)

    @pl.when(pl.program_id(1) == pl.num_programs(1) - 1)
    def _():
        z = acc_ref[...] + b_ref[...] + r_ref[...].astype(jnp.float32)
        # single-pass LN stats: one fewer full-N cross-lane (XLU) reduction
        mu = jnp.mean(z, axis=-1, keepdims=True)
        var = jnp.mean(z * z, axis=-1, keepdims=True) - mu * mu
        o_ref[...] = ((z - mu) * jax.lax.rsqrt(var + eps) * g_ref[...]
                      + bb_ref[...]).astype(o_ref.dtype)


def pallas_linear_residual_ln(x2d, w, b, res2d, gamma, beta, eps=1e-5):
    """out = LayerNorm(res + x @ w + b).  N (= d_model) kept whole so the LN
    reduction sees the full feature dim; tk is capped so the double-buffered
    (tk, N) weight block stays within ~1/4 of the VMEM budget (v7x-safe)."""
    M, K = x2d.shape
    N = w.shape[1]
    tm = _pick_tile(M, TILE_M, align=8)
    tk_cap = max(128, (VMEM_LIMIT_BYTES // 4) // (N * 4 * 2) // 128 * 128)
    tk = _pick_tile(K, min(TILE_K, tk_cap), align=128)
    kernel = functools.partial(_linear_res_ln_kernel, eps=eps)
    return pl.pallas_call(
        kernel,
        out_shape=jax.ShapeDtypeStruct((M, N), jnp.float32),
        grid=(M // tm, K // tk),
        in_specs=[
            pl.BlockSpec((tm, tk), lambda i, k: (i, k)),
            pl.BlockSpec((tk, N), lambda i, k: (k, 0)),
            pl.BlockSpec((1, N), lambda i, k: (0, 0)),
            pl.BlockSpec((tm, N), lambda i, k: (i, 0)),
            pl.BlockSpec((1, N), lambda i, k: (0, 0)),
            pl.BlockSpec((1, N), lambda i, k: (0, 0)),
        ],
        out_specs=pl.BlockSpec((tm, N), lambda i, k: (i, 0)),
        scratch_shapes=[pltpu.VMEM((tm, N), jnp.float32)],
        compiler_params=pltpu.CompilerParams(
            dimension_semantics=("parallel", "arbitrary"),
            vmem_limit_bytes=VMEM_LIMIT_BYTES),
    )(x2d, w, b.reshape(1, N), res2d, gamma.reshape(1, N), beta.reshape(1, N))


def _flash_mha_kernel(lens_ref, q_ref, k_ref, v_ref, o_ref,
                      m_sc, l_sc, acc_sc, *,
                      scale, causal, use_lens, blk_q, blk_k):
    """Flash-style attention: one (batch, head, q-tile) owns the m/l/acc
    scratch; the k-tile grid axis is the online-softmax reduction.  Masks are
    built in-kernel from iota compares (causal) / SMEM valid lengths."""
    b = pl.program_id(0)
    qi = pl.program_id(2)
    ki = pl.program_id(3)

    @pl.when(ki == 0)
    def _():
        m_sc[...] = jnp.full(m_sc.shape, -jnp.inf, m_sc.dtype)
        l_sc[...] = jnp.zeros_like(l_sc)
        acc_sc[...] = jnp.zeros_like(acc_sc)

    def attend():
        q = q_ref[0].astype(MXU_DTYPE)              # (blk_q, dkp) lane-aligned
        k = k_ref[0].astype(MXU_DTYPE)              # (blk_k, dkp)
        s = jax.lax.dot_general(q, k, (((1,), (1,)), ((), ())),
                                preferred_element_type=jnp.float32) * scale
        if causal:
            row = qi * blk_q + jax.lax.broadcasted_iota(
                jnp.int32, (blk_q, blk_k), 0)
            col = ki * blk_k + jax.lax.broadcasted_iota(
                jnp.int32, (blk_q, blk_k), 1)
            s = jnp.where(col <= row, s, -1e9)
        if use_lens:
            col = ki * blk_k + jax.lax.broadcasted_iota(
                jnp.int32, (blk_q, blk_k), 1)
            s = jnp.where(col < lens_ref[b], s, -1e9)

        m_prev = m_sc[...]
        m_new = jnp.maximum(m_prev, jnp.max(s, axis=-1, keepdims=True))
        alpha = jnp.exp(m_prev - m_new)
        p = jnp.exp(s - m_new)
        l_sc[...] = alpha * l_sc[...] + jnp.sum(p, axis=-1, keepdims=True)
        acc_sc[...] = alpha * acc_sc[...] + jnp.dot(
            p.astype(MXU_DTYPE), v_ref[0].astype(MXU_DTYPE),
            preferred_element_type=jnp.float32)
        m_sc[...] = m_new

    if causal:
        # skip key tiles entirely above the causal diagonal
        pl.when(ki * blk_k <= qi * blk_q + (blk_q - 1))(attend)
    else:
        attend()

    @pl.when(ki == pl.num_programs(3) - 1)
    def _():
        o_ref[0] = (acc_sc[...] *
                    pl.reciprocal(l_sc[...], approx=True)).astype(o_ref.dtype)


def pallas_attention(q_src, kv_src, lens, *, num_heads, dk, dkp,
                     q_base, k_base, v_base, causal, use_lens):
    """q_src: (B, Sq, Wq), kv_src: (B, Sk, Wk) — fused projection slabs with
    128-lane-padded per-head blocks; q_base/k_base/v_base select the Q/K/V
    column blocks (in dkp units) directly via the BlockSpec index_map, so the
    slabs are never re-sliced in HBM.  `lens` (B,) int32 goes through scalar
    prefetch (SMEM) for the key-padding mask."""
    B, Sq, _ = q_src.shape
    Sk = kv_src.shape[1]
    blk_q = _pick_tile(Sq, 128, align=8)
    blk_k = _pick_tile(Sk, 128, align=8)
    kernel = functools.partial(
        _flash_mha_kernel, scale=1.0 / math.sqrt(dk), causal=causal,
        use_lens=use_lens, blk_q=blk_q, blk_k=blk_k)
    return pl.pallas_call(
        kernel,
        out_shape=jax.ShapeDtypeStruct((B, Sq, num_heads * dkp), ACT_DTYPE),
        grid_spec=pltpu.PrefetchScalarGridSpec(
            num_scalar_prefetch=1,
            grid=(B, num_heads, Sq // blk_q, Sk // blk_k),
            in_specs=[
                pl.BlockSpec((1, blk_q, dkp),
                             lambda b, h, qi, ki, lens: (b, qi, q_base + h)),
                pl.BlockSpec((1, blk_k, dkp),
                             lambda b, h, qi, ki, lens: (b, ki, k_base + h)),
                pl.BlockSpec((1, blk_k, dkp),
                             lambda b, h, qi, ki, lens: (b, ki, v_base + h)),
            ],
            out_specs=pl.BlockSpec((1, blk_q, dkp),
                                   lambda b, h, qi, ki, lens: (b, qi, h)),
            scratch_shapes=[pltpu.VMEM((blk_q, 1), jnp.float32),
                            pltpu.VMEM((blk_q, 1), jnp.float32),
                            pltpu.VMEM((blk_q, dkp), jnp.float32)]),
        compiler_params=pltpu.CompilerParams(
            dimension_semantics=("parallel", "parallel", "parallel",
                                 "arbitrary"),
            vmem_limit_bytes=VMEM_LIMIT_BYTES),
    )(lens, q_src, kv_src, kv_src)


# ---------------------------------------------------- parameter preparation

def _pad_head_cols(w, b, num_heads, dkp):
    """[D, H*dk] weight / [H*dk] bias -> head-major, 128-lane-padded heads."""
    D = w.shape[0]
    dk = w.shape[1] // num_heads
    if dkp == dk:
        return w.astype(MXU_DTYPE), b
    wp = jnp.zeros((D, num_heads, dkp), jnp.float32)
    wp = wp.at[:, :, :dk].set(w.reshape(D, num_heads, dk))
    bp = jnp.zeros((num_heads, dkp), jnp.float32)
    bp = bp.at[:, :dk].set(b.reshape(num_heads, dk))
    return (wp.reshape(D, num_heads * dkp).astype(MXU_DTYPE),
            bp.reshape(num_heads * dkp))


def _pad_head_rows(wo, num_heads, dkp):
    """[H*dk, D] output projection -> zero rows at padded head positions."""
    dk = wo.shape[0] // num_heads
    D = wo.shape[1]
    if dkp == dk:
        return wo.astype(MXU_DTYPE)
    wp = jnp.zeros((num_heads, dkp, D), jnp.float32)
    wp = wp.at[:, :dk, :].set(wo.reshape(num_heads, dk, D))
    return wp.reshape(num_heads * dkp, D).astype(MXU_DTYPE)


def prepare_decoder_params(params, num_heads, d_model):
    """One-time weight fusion / head padding / bf16 cast (NOT per forward)."""
    dk = d_model // num_heads
    dkp = max(128, _round_up(dk, 128))
    sp, cp = params["self_attn"], params["cross_attn"]

    swq, sbq = _pad_head_cols(sp["wq"], sp["bq"], num_heads, dkp)
    swk, sbk = _pad_head_cols(sp["wk"], sp["bk"], num_heads, dkp)
    swv, sbv = _pad_head_cols(sp["wv"], sp["bv"], num_heads, dkp)
    cwq, cbq = _pad_head_cols(cp["wq"], cp["bq"], num_heads, dkp)
    cwk, cbk = _pad_head_cols(cp["wk"], cp["bk"], num_heads, dkp)
    cwv, cbv = _pad_head_cols(cp["wv"], cp["bv"], num_heads, dkp)

    fused = {
        "self_w_qkv": jnp.concatenate([swq, swk, swv], axis=1),
        "self_b_qkv": jnp.concatenate([sbq, sbk, sbv]),
        "self_wo": _pad_head_rows(sp["wo"], num_heads, dkp),
        "self_bo": sp["bo"],
        "cross_wq": cwq, "cross_bq": cbq,
        "cross_w_kv": jnp.concatenate([cwk, cwv], axis=1),
        "cross_b_kv": jnp.concatenate([cbk, cbv]),
        "cross_wo": _pad_head_rows(cp["wo"], num_heads, dkp),
        "cross_bo": cp["bo"],
        "ffn_w1": params["ffn_w1"].astype(MXU_DTYPE), "ffn_b1": params["ffn_b1"],
        "ffn_w2": params["ffn_w2"].astype(MXU_DTYPE), "ffn_b2": params["ffn_b2"],
    }
    for k in ("norm1_g", "norm1_b", "norm2_g", "norm2_b", "norm3_g", "norm3_b"):
        fused[k] = params[k]
    return fused


# ------------------------------------------------------------- module glue

def decoder_layer(tgt, memory, mem_valid_lens, fused, num_heads):
    """Causal self-attention + cross-attention (key-padding via valid lengths)
    + FFN, each followed by residual + LayerNorm.  Dropout = identity (eval).
    # TODO(synk): arbitrary dense attention masks (beyond causal / padding)
    # would need a dense-mask input path in the attention kernel."""
    B, S, D = tgt.shape
    Sm = memory.shape[1]
    H = num_heads
    dk = D // num_heads
    dkp = max(128, _round_up(dk, 128))

    x2d = tgt.reshape(B * S, D).astype(jnp.float32)
    full_lens = jnp.full((B,), S, jnp.int32)          # unused when causal

    # -- sub-layer 1: masked (causal) self-attention + residual + LayerNorm --
    qkv = pallas_linear(x2d, fused["self_w_qkv"], fused["self_b_qkv"],
                        out_dtype=ACT_DTYPE).reshape(B, S, 3 * H * dkp)
    sa = pallas_attention(qkv, qkv, full_lens, num_heads=H, dk=dk, dkp=dkp,
                          q_base=0, k_base=H, v_base=2 * H,
                          causal=True, use_lens=False)
    x2d = pallas_linear_residual_ln(sa.reshape(B * S, H * dkp),
                                    fused["self_wo"], fused["self_bo"],
                                    x2d, fused["norm1_g"], fused["norm1_b"])

    # -- sub-layer 2: cross-attention over encoder memory --------------------
    q = pallas_linear(x2d, fused["cross_wq"], fused["cross_bq"],
                      out_dtype=ACT_DTYPE).reshape(B, S, H * dkp)
    kv = pallas_linear(memory.reshape(B * Sm, D).astype(jnp.float32),
                       fused["cross_w_kv"], fused["cross_b_kv"],
                       out_dtype=ACT_DTYPE).reshape(B, Sm, 2 * H * dkp)
    ca = pallas_attention(q, kv, mem_valid_lens.astype(jnp.int32),
                          num_heads=H, dk=dk, dkp=dkp,
                          q_base=0, k_base=0, v_base=H,
                          causal=False, use_lens=True)
    x2d = pallas_linear_residual_ln(ca.reshape(B * S, H * dkp),
                                    fused["cross_wo"], fused["cross_bo"],
                                    x2d, fused["norm2_g"], fused["norm2_b"])

    # -- sub-layer 3: position-wise FFN + residual + LayerNorm ----------------
    h = pallas_linear(x2d, fused["ffn_w1"], fused["ffn_b1"],
                      activation="relu", out_dtype=ACT_DTYPE)
    x2d = pallas_linear_residual_ln(h, fused["ffn_w2"], fused["ffn_b2"],
                                    x2d, fused["norm3_g"], fused["norm3_b"])
    return x2d.reshape(B, S, D)


# -------------------------------------------------------- pure-JAX reference

def _ref_mha(x_q, x_kv, mask, p, num_heads):
    B, Sq, D = x_q.shape
    Sk = x_kv.shape[1]
    dk = D // num_heads
    q = (x_q @ p["wq"] + p["bq"]).reshape(B, Sq, num_heads, dk).transpose(0, 2, 1, 3)
    k = (x_kv @ p["wk"] + p["bk"]).reshape(B, Sk, num_heads, dk).transpose(0, 2, 1, 3)
    v = (x_kv @ p["wv"] + p["bv"]).reshape(B, Sk, num_heads, dk).transpose(0, 2, 1, 3)
    s = jnp.einsum("bhqd,bhkd->bhqk", q, k) / math.sqrt(dk)
    s = jnp.where(mask == 0.0, -1e9, s)
    a = jax.nn.softmax(s, axis=-1)
    o = jnp.einsum("bhqk,bhkd->bhqd", a, v).transpose(0, 2, 1, 3).reshape(B, Sq, D)
    return o @ p["wo"] + p["bo"]


def _ref_ln(z, g, b, eps=1e-5):
    mu = jnp.mean(z, axis=-1, keepdims=True)
    var = jnp.mean(jnp.square(z - mu), axis=-1, keepdims=True)
    return (z - mu) * jax.lax.rsqrt(var + eps) * g + b


def ref_decoder_layer(tgt, memory, tgt_mask, memory_mask, params, num_heads):
    sa = _ref_mha(tgt, tgt, tgt_mask, params["self_attn"], num_heads)
    tgt = _ref_ln(tgt + sa, params["norm1_g"], params["norm1_b"])
    ca = _ref_mha(tgt, memory, memory_mask, params["cross_attn"], num_heads)
    tgt = _ref_ln(tgt + ca, params["norm2_g"], params["norm2_b"])
    h = jnp.maximum(tgt @ params["ffn_w1"] + params["ffn_b1"], 0.0)
    ff = h @ params["ffn_w2"] + params["ffn_b2"]
    return _ref_ln(tgt + ff, params["norm3_g"], params["norm3_b"])


# ------------------------------------------------------------------- main

def make_attn_params(key, D):
    ks = jax.random.split(key, 8)
    w = lambda k: 0.05 * jax.random.normal(k, (D, D), jnp.float32)
    bvec = lambda k: 0.02 * jax.random.normal(k, (D,), jnp.float32)
    return {"wq": w(ks[0]), "bq": bvec(ks[1]),
            "wk": w(ks[2]), "bk": bvec(ks[3]),
            "wv": w(ks[4]), "bv": bvec(ks[5]),
            "wo": w(ks[6]), "bo": bvec(ks[7])}


if __name__ == "__main__":
    B, S, Sm = 2, 8, 16
    d_model, num_heads, d_ff = 256, 2, 512   # dk = 128 -> lane-aligned heads

    key = jax.random.PRNGKey(0)
    k_tgt, k_mem, k_sa, k_ca, k_f1, k_f2, k_ln = jax.random.split(key, 7)
    kls = jax.random.split(k_ln, 6)

    params = {
        "self_attn": make_attn_params(k_sa, d_model),
        "cross_attn": make_attn_params(k_ca, d_model),
        "ffn_w1": 0.05 * jax.random.normal(k_f1, (d_model, d_ff), jnp.float32),
        "ffn_b1": 0.02 * jax.random.normal(jax.random.fold_in(k_f1, 1), (d_ff,), jnp.float32),
        "ffn_w2": 0.05 * jax.random.normal(k_f2, (d_ff, d_model), jnp.float32),
        "ffn_b2": 0.02 * jax.random.normal(jax.random.fold_in(k_f2, 1), (d_model,), jnp.float32),
        "norm1_g": 1.0 + 0.1 * jax.random.normal(kls[0], (d_model,), jnp.float32),
        "norm1_b": 0.1 * jax.random.normal(kls[1], (d_model,), jnp.float32),
        "norm2_g": 1.0 + 0.1 * jax.random.normal(kls[2], (d_model,), jnp.float32),
        "norm2_b": 0.1 * jax.random.normal(kls[3], (d_model,), jnp.float32),
        "norm3_g": 1.0 + 0.1 * jax.random.normal(kls[4], (d_model,), jnp.float32),
        "norm3_b": 0.1 * jax.random.normal(kls[5], (d_model,), jnp.float32),
    }

    tgt = jax.random.normal(k_tgt, (B, S, d_model), jnp.float32)
    memory = jax.random.normal(k_mem, (B, Sm, d_model), jnp.float32)

    # encoder-memory key padding: batch 1 only attends to 12 of 16 positions
    mem_valid = jnp.array([Sm, 12], jnp.int32)

    fused = prepare_decoder_params(params, num_heads, d_model)
    out = decoder_layer(tgt, memory, mem_valid, fused, num_heads)
    out = jax.block_until_ready(out)

    # dense masks only for the pure-JAX reference (kernel builds them in-kernel)
    tgt_mask = jnp.tril(jnp.ones((S, S), jnp.float32)).reshape(1, 1, S, S)
    memory_mask = (jnp.arange(Sm)[None, :] < mem_valid[:, None]).astype(jnp.float32)
    memory_mask = memory_mask.reshape(B, 1, 1, Sm)
    ref = ref_decoder_layer(tgt, memory, tgt_mask, memory_mask, params, num_heads)

    assert out.shape == (B, S, d_model)
    max_err = float(jnp.max(jnp.abs(out - ref)))
    # bf16 MXU inputs -> looser tolerance vs the f32 reference (expected).
    assert jnp.allclose(out, ref, atol=5e-2, rtol=5e-2), (
        "mismatch vs reference: max abs err = %e" % max_err)

    print("KERNEL_OK")
</pallas_src>

<mosaic_0001>
module attributes {stable_mosaic.version = 11 : i64} {
  func.func @_linear_kernel(%arg0: i32, %arg1: i32, %arg2: i32, %arg3: memref<16x256xf32, #tpu.memory_space<vmem>>, %arg4: memref<256x256xbf16, #tpu.memory_space<vmem>>, %arg5: memref<1x256xf32, #tpu.memory_space<vmem>>, %arg6: memref<16x256xbf16, #tpu.memory_space<vmem>>, %arg7: memref<16x256xf32, #tpu.memory_space<vmem>>) attributes {dimension_semantics = [#tpu.dimension_semantics<parallel>, #tpu.dimension_semantics<parallel>, #tpu.dimension_semantics<arbitrary>], iteration_bounds = array<i64: 1, 3, 1>, scalar_prefetch = 0 : i64, scratch_operands = 1 : i64, tpu.core_type = #tpu.core_type<tc>, window_params = [{transform_indices = @transform_0, window_bounds = array<i64: 16, 256>}, {transform_indices = @transform_1, window_bounds = array<i64: 256, 256>}, {transform_indices = @transform_2, window_bounds = array<i64: 1, 256>}, {transform_indices = @transform_3, window_bounds = array<i64: 16, 256>}]} {
    %c0_i32 = arith.constant 0 : i32
    %0 = arith.cmpi eq, %arg2, %c0_i32 : i32
    %1 = arith.extui %0 : i1 to i32
    %c0_i32_0 = arith.constant 0 : i32
    %2 = arith.cmpi ne, %1, %c0_i32_0 : i32
    scf.if %2 {
      %cst_10 = arith.constant 0.000000e+00 : f32
      %13 = vector.broadcast %cst_10 : f32 to vector<16x256xf32>
      %c0_11 = arith.constant 0 : index
      %c0_12 = arith.constant 0 : index
      %14 = vector.load %arg7[%c0_11, %c0_12] : memref<16x256xf32, #tpu.memory_space<vmem>>, vector<16x256xf32>
      tpu.vector_store %arg7[%c0_11, %c0_12], %13 {strides = array<i32>} : memref<16x256xf32, #tpu.memory_space<vmem>>, vector<16x256xf32>,
    } else {
    }
    %c0 = arith.constant 0 : index
    %c0_1 = arith.constant 0 : index
    %3 = vector.load %arg7[%c0, %c0_1] : memref<16x256xf32, #tpu.memory_space<vmem>>, vector<16x256xf32>
    %c0_2 = arith.constant 0 : index
    %c0_3 = arith.constant 0 : index
    %4 = vector.load %arg3[%c0_2, %c0_3] : memref<16x256xf32, #tpu.memory_space<vmem>>, vector<16x256xf32>
    %5 = arith.truncf %4 : vector<16x256xf32> to vector<16x256xbf16>
    %c0_4 = arith.constant 0 : index
    %c0_5 = arith.constant 0 : index
    %6 = vector.load %arg4[%c0_4, %c0_5] : memref<256x256xbf16, #tpu.memory_space<vmem>>, vector<256x256xbf16>
    %cst = arith.constant dense<0.000000e+00> : vector<16x256xf32>
    %7 = tpu.matmul %5, %6, %cst {dimension_numbers = #tpu.dot_dimension_numbers<[1], [0], [0], [1], [0, 0, 1, 1], [], []>} : vector<16x256xbf16>, vector<256x256xbf16>, vector<16x256xf32> -> vector<16x256xf32>
    %8 = arith.addf %3, %7 : vector<16x256xf32>
    %c0_6 = arith.constant 0 : index
    %c0_7 = arith.constant 0 : index
    %9 = vector.load %arg7[%c0_6, %c0_7] : memref<16x256xf32, #tpu.memory_space<vmem>>, vector<16x256xf32>
    tpu.vector_store %arg7[%c0_6, %c0_7], %8 {strides = array<i32>} : memref<16x256xf32, #tpu.memory_space<vmem>>, vector<16x256xf32>,
    %c0_i32_8 = arith.constant 0 : i32
    %10 = arith.cmpi eq, %arg2, %c0_i32_8 : i32
    %11 = arith.extui %10 : i1 to i32
    %c0_i32_9 = arith.constant 0 : i32
    %12 = arith.cmpi ne, %11, %c0_i32_9 : i32
    scf.if %12 {
      %c0_10 = arith.constant 0 : index
      %c0_11 = arith.constant 0 : index
      %13 = vector.load %arg7[%c0_10, %c0_11] : memref<16x256xf32, #tpu.memory_space<vmem>>, vector<16x256xf32>
      %c0_12 = arith.constant 0 : index
      %c0_13 = arith.constant 0 : index
      %14 = vector.load %arg5[%c0_12, %c0_13] : memref<1x256xf32, #tpu.memory_space<vmem>>, vector<1x256xf32>
      %15 = vector.broadcast %14 : vector<1x256xf32> to vector<16x256xf32>
      %16 = arith.addf %13, %15 : vector<16x256xf32>
      %17 = arith.truncf %16 : vector<16x256xf32> to vector<16x256xbf16>
      %c0_14 = arith.constant 0 : index
      %c0_15 = arith.constant 0 : index
      %18 = vector.load %arg6[%c0_14, %c0_15] : memref<16x256xbf16, #tpu.memory_space<vmem>>, vector<16x256xbf16>
      tpu.vector_store %arg6[%c0_14, %c0_15], %17 {strides = array<i32>} : memref<16x256xbf16, #tpu.memory_space<vmem>>, vector<16x256xbf16>,
    } else {
    }
    return
  }
  func.func @transform_0(%arg0: i32, %arg1: i32, %arg2: i32) -> (i32, i32) {
    %c0_i32 = arith.constant 0 : i32
    return %arg0, %arg2 : i32, i32
  }
  func.func @transform_1(%arg0: i32, %arg1: i32, %arg2: i32) -> (i32, i32) {
    %c0_i32 = arith.constant 0 : i32
    return %arg2, %arg1 : i32, i32
  }
  func.func @transform_2(%arg0: i32, %arg1: i32, %arg2: i32) -> (i32, i32) {
    %c0_i32 = arith.constant 0 : i32
    %c0_i32_0 = arith.constant 0 : i32
    return %c0_i32, %arg1 : i32, i32
  }
  func.func @transform_3(%arg0: i32, %arg1: i32, %arg2: i32) -> (i32, i32) {
    %c0_i32 = arith.constant 0 : i32
    return %arg0, %arg1 : i32, i32
  }
}

</mosaic_0001>

<bundles_post_ra>
// kernel: tpu_custom_call.1
= control target key start
LH: loop header
LB: loop body
LE: loop exit
PB: predicated region body
PF: predicated region fallthrough
CT: control target
= control target key end

     0   :  { %8 = vsyncpa [#allocation4], 0  ;;  %s1354_s0 = inlined_call_operand.hbm [shape: f32[16,256], index: 0, kind: input, shape index: {}]   ;;  %s1355_s1 = inlined_call_operand.hbm [shape: bf16[256,768], index: 1, kind: input, shape index: {}]   ;;  %s1356_s2 = inlined_call_operand.hbm [shape: f32[1,768], index: 2, kind: input, shape index: {}]   ;;  %s1357_s3 = inlined_call_operand.hbm [shape: bf16[16,768], index: 3, kind: output, shape index: {}]  }
   0x1   :  { %9 = vsyncpa [#allocation7], 0 }
   0x2   :  { %11 = vsyncpa [#allocation7 + $0x1], 0 }
   0x3   :  { %12 = vsyncpa [#allocation5], 0 }
   0x4   :  { %14 = vsyncpa [#allocation5 + $0x1], 0  ;;  %s1121_s12 = smov 0   ;;  %s1123_s13 = smov 0  }
   0x5   :  { %s1125_s14 = smov 0   ;;  %s1127_s15 = smov 0  }
   0x6   :  { %s1129_s16 = smov 0   ;;  %s1131_s17 = smov 0  }
   0x7 LB: > { %s35_s18 = sadd.s32 1, %s1083_s16  ;;  %s76_s19 = sadd.s32 1, %s1075_s14  ;;  %s1087_s17 = sphi %s1131_s17, %s20_s17   ;;  %s1083_s16 = sphi %s1129_s16, %s1376_s16   ;;  %s1079_s15 = sphi %s1127_s15, %s1375_s15   ;;  %s1075_s14 = sphi %s1125_s14, %s1374_s14   ;;  %s1071_s13 = sphi %s1123_s13, %s1373_s13   ;;  %s1067_s12 = sphi %s1121_s12, %s1372_s12  }
   0x8   : > { %p37_p0 = scmp.ge.s32.totalorder %s35_s18, 3  ;;  %p83_p1 = scmp.ne.s32.totalorder %s1075_s14, %s1071_s13 }
   0x9   : > { %p84_p2 = scmp.eq.s32.totalorder %s1087_s17, 0  ;;  %p813_p4 = scmp.lt.s32.totalorder %s1087_s17, 3 }
   0xa   : > { %s1378_s18 = smov (%p37_p0, %s35_s18), 0  ;;  %s186_s21 = sand.u32 1, %s1087_s17  }
   0xb   : > { %p85_p3 = por %p84_p2, %p83_p1  ;;  %s72_s20 = ssub.s32 %s1083_s16, %s1378_s18 }
   0xc   : > { %p74_p5 = scmp.eq.s32.totalorder %s72_s20, 0  ;;  %s188_s22 = sand.u32 1, %s1075_s14  }
   0xd   : > { %s782_s23 = sshll.u32 %s1083_s16, 7  ;;  %s732_s25 = sshll.u32 %s188_s22, 8 }
   0xe   : > { %s1168_s24 = scalar_select %p74_p5, %s1075_s14, %s76_s19  }
   0xf   : > { %s199_s28 = scalar_lea.hbm %s1355_s1, %s782_s23  ;;  %p1175_p6 = pnand %p813_p4, %p85_p3 }
  0x10   : > { %s190_s30 = scalar_lea.vmem [#allocation6], %s732_s25  ;;  %s1179_s5 = scalar_lea.sflag [#allocation7], %s186_s21 }
  0x11   : > { %s200_s4 = sshll.u32 %s190_s30, 4  ;;  %p1359_p7 = pneg %p1175_p6  ;;  %s201_s4 = int_to_ptr.vmem [resolvable:$true] %s200_s4 }
  0x12   : > { %s934_s6 = scalar_lea.vmem %s201_s4, 4096  ;;  %s1089_s7 = smov [#allocation6]  }
  0x13   : > { %p935_p8 = scmp.ne.s32.totalorder %s201_s4, %s934_s6  ;;  %s939_s8 = sshll.u32 %s1089_s7, 4  ;;  %s940_s8 = int_to_ptr.vmem [resolvable:$false] %s939_s8 }
  0x14   : > { %s941_s9 = scalar_lea.vmem %s940_s8, 8192  ;;  %p942_p11 = scmp.lt.s32.totalorder %s201_s4, %s940_s8 }
  0x15   : > { %p937_p9 = pnand %p935_p8, %p1359_p7  ;;  %p943_p12 = scmp.lt.s32.totalorder %s941_s9, %s934_s6 }
  0x17   : > { %p938_p10 = pneg %p937_p9  ;;  %p944_p13 = por %p943_p12, %p942_p11 }
  0x19   : > { %p945_p0 = pnand %p944_p13, %p938_p10 }
  0x1b   : > { %948 = shalt.err (!%p945_p0)
}
  0x1c   : > { %s1090_s10 = smov 384   ;;  %s1091_s11 = smov 128  }
  0x1d   : > { %s1092_s19 = smov 8   ;;  %s1190_s20 = sadd.s32 4294967295, %s1087_s17  }
  0x1e   : > { %804 = dma.hbm_to_vmem [thread:$0]  (!%p1175_p6), %s199_s28, 4096, %s201_s4, %s1179_s5, %s1090_s10, %s1091_s11, %s1092_s19  }
  0x1f   : > { %s728_s21 = sadd.s32 4294967294, %s1087_s17   ;;  %p89_p2 = scmp.ne.s32.totalorder %s1071_s13, %s1067_s12 }
  0x20   : > { %p1358_p3 = scmp.eq.s32.totalorder %s1190_s20, 0  ;;  %p141_p4 = scmp.eq.s32.totalorder %s1190_s20, 2 }
  0x21   : > { %p147_p5 = scmp.eq.s32.totalorder %s728_s21, 2  ;;  %p729_p9 = scmp.ge.s32.totalorder %s1087_s17, 1 }
  0x22   : > { %p1199_p8 = por %p1358_p3, %p89_p2  ;;  %p1207_p10 = por %p141_p4, %p83_p1 }
  0x23   : > { %p1211_p11 = por %p147_p5, %p89_p2  ;;  %p154_p12 = scmp.lt.s32.totalorder %s1087_s17, 4 }
  0x24   : > { %s1363_s25 = scalar_select %p1207_p10, 1, 0 }
  0x25   : > { %s1364_s26 = scalar_select %p1211_p11, 1, 0 }
  0x26   : > { %p1216_p13 = pnand %p729_p9, %p154_p12  ;;  %s1093_s28 = smov [#allocation3]  }
  0x27   : > { %s172_s30 = sshll.u32 %s1093_s28, 4  ;;  %s735_s4 = sshll.u32 %s188_s22, 1  ;;  %s173_s30 = int_to_ptr.vmem [resolvable:$true] %s172_s30 }
  0x28   : > { %p797_p0 = pneg %p1216_p13  ;;  %s783_s6 = sshll.u32 %s1083_s16, 5 }
  0x29   : > { %s1234_s10 = scalar_lea.hbm %s1356_s2, %s783_s6  ;;  %s214_s11 = scalar_lea.vmem [#allocation8], %s735_s4 }
  0x2a   : > { %p1227_p1 = pnand %p797_p0, %p1358_p3  ;;  %s222_s19 = sshll.u32 %s214_s11, 4  ;;  %s223_s19 = int_to_ptr.vmem [resolvable:$true] %s222_s19 }
  0x2b   : > { %s960_s21 = scalar_lea.vmem %s173_s30, 512  ;;  %p968_p12 = scmp.lt.s32.totalorder %s173_s30, %s173_s30 }
  0x2c   : > { %p951_p2 = pneg %p1227_p1  ;;  %p961_p4 = scmp.ne.s32.totalorder %s173_s30, %s960_s21 }
  0x2d   : > { %p969_p0 = scmp.lt.s32.totalorder %s960_s21, %s960_s21 }
  0x2e   : > { %p963_p5 = pnand %p961_p4, %p951_p2 }
  0x2f   : > { %p970_p3 = por %p969_p0, %p968_p12 }
  0x30   : > { %p964_p9 = pneg %p963_p5 }
  0x32   : > { %p971_p7 = pnand %p970_p3, %p964_p9 }
  0x34   : > { %974 = shalt.err (!%p971_p7)
}
  0x35   : > { %s1094_s22 = smov 256   ;;  %s1095_s28 = smov 16  }
  0x36   : > { %800 = dma.hbm_to_vmem [thread:$0]  (!%p1227_p1), %s1354_s0, 512, %s173_s30, [#allocation4], %s1094_s22, %s1094_s22, %s1095_s28  }
  0x37   : > { %s988_s8 = scalar_lea.vmem %s223_s19, 32  ;;  %p1367_p10 = pneg %p1175_p6 }
  0x38   : > { %p989_p11 = scmp.ne.s32.totalorder %s223_s19, %s988_s8  ;;  %s1096_s9 = smov [#allocation8]  }
  0x39   : > { %s993_s11 = sshll.u32 %s1096_s9, 4  ;;  %s994_s11 = int_to_ptr.vmem [resolvable:$false] %s993_s11 }
  0x3a   : > { %p991_p2 = pnand %p989_p11, %p1367_p10  ;;  %s995_s21 = scalar_lea.vmem %s994_s11, 64 }
  0x3b   : > { %p996_p7 = scmp.lt.s32.totalorder %s223_s19, %s994_s11  ;;  %p997_p3 = scmp.lt.s32.totalorder %s995_s21, %s988_s8 }
  0x3c   : > { %p992_p4 = pneg %p991_p2 }
  0x3d   : > { %p998_p5 = por %p997_p3, %p996_p7 }
  0x3f   : > { %p999_p9 = pnand %p998_p5, %p992_p4 }
  0x41   : > { %1002 = shalt.err (!%p999_p9)
}
  0x42   : > { %807 = dma.hbm_to_vmem [thread:$0]  (!%p1175_p6), %s1234_s10, 32, %s223_s19, %s1179_s5  }
  0x43   : > { %231 = sbr.rel (%p1216_p13) target bundleno = 360 (0x168), region = 32  ;;  %p1368_p10 = scmp.eq.s32.totalorder (!%p1216_p13), %s1190_s20, 0 }
  0x48   : > { %1054 = dma.done.wait (%p1368_p10), [#allocation4], 512   ;;  %p1369_p11 = pmov %p1368_p10 }
  0x49   : > { %s237_s30 = sand.u32 1, %s1190_s20   ;;  %s1258_s7 = sand.u32 1, %s1071_s13  }
  0x4a   : > { %1056 = vsyncadd (%p1369_p11), [#allocation4], 4294966784  ;;  %s740_s29 = sshll.u32 %s1258_s7, 8  ;;  %s238_s22 = scalar_lea.sflag [#allocation7], %s237_s30 }
  0x4b   : > { %s1261_s28 = scalar_lea.vmem [#allocation6], %s740_s29 }
  0x4c   : > { %1058 = dma.done.wait (%p1199_p8), %s238_s22, 4128  }
  0x4d   : > { %1060 = vsyncadd (%p1199_p8), %s238_s22, 4294963168  ;;  %v873_v0 = vld [vmem:[%s1261_s28 + $0x74] ss:$8 sps:$4 sm:$0xff]   ;;  %v875_v1 = vld [vmem:[%s1261_s28 + $0x70] ss:$8 sps:$4 sm:$0xff]   ;;  %v555_v38 = vlaneseq  ;;  %s741_s5 = sshll.u32 %s1258_s7, 1 }
  0x4e   : > { %495 = vmatprep.subr.bf16.mxu0 %v873_v0  ;;  %v876_v2 = vld [vmem:[%s1261_s28 + $0x64] ss:$8 sps:$4 sm:$0xff]   ;;  %v878_v3 = vld [vmem:[%s1261_s28 + $0x60] ss:$8 sps:$4 sm:$0xff]   ;;  %v879_v4 = vld [vmem:[%s1261_s28 + $0x54] ss:$8 sps:$4 sm:$0xff]  }
  0x4f   : > { %496 = vmatpush1.bf16.msra.mxu0 %v875_v1  ;;  %v881_v5 = vld [vmem:[%s1261_s28 + $0x50] ss:$8 sps:$4 sm:$0xff]   ;;  %v882_v6 = vld [vmem:[%s1261_s28 + $0x44] ss:$8 sps:$4 sm:$0xff]   ;;  %v884_v7 = vld [vmem:[%s1261_s28 + $0x40] ss:$8 sps:$4 sm:$0xff]  }
  0x50   : > { %497 = vmatprep.subr.bf16.mxu0 %v876_v2  ;;  %v885_v8 = vld [vmem:[%s1261_s28 + $0x34] ss:$8 sps:$4 sm:$0xff]   ;;  %v887_v9 = vld [vmem:[%s1261_s28 + $0x30] ss:$8 sps:$4 sm:$0xff]   ;;  %v888_v10 = vld [vmem:[%s1261_s28 + $0x24] ss:$8 sps:$4 sm:$0xff]  }
  0x51   : > { %v890_v11 = vld [vmem:[%s1261_s28 + $0x20] ss:$8 sps:$4 sm:$0xff]   ;;  %v891_v12 = vld [vmem:[%s1261_s28 + $0x14] ss:$8 sps:$4 sm:$0xff]   ;;  %v893_v16 = vld [vmem:[%s1261_s28 + $0x10] ss:$8 sps:$4 sm:$0xff]  }
  0x52   : > { %v298_v13 = vld [vmem:[#allocation3 + $0x8] sm:$0xff]  ;;  %v300_v14 = vld [vmem:[#allocation3 + $0x18] sm:$0xff]  ;;  %v297_v35 = vld [vmem:[#allocation3] sm:$0xff]  ;;  %v556_v39 = vshrl.u32 %v555_v38, 7  ;;  %s250_s20 = scalar_lea.vmem [#allocation8], %s741_s5  ;;  %s742_s23 = sshll.u32 %s1258_s7, 4 }
  0x53   : > { %498 = vmatpush1.bf16.msra.mxu0 %v878_v3  ;;  %v302_v15 = vpack.c.bf16 %v300_v14, %v298_v13  ;;  %v894_v17 = vld [vmem:[%s1261_s28 + $0x4] ss:$8 sps:$4 sm:$0xff]   ;;  %v896_v18 = vld [vmem:[%s1261_s28] ss:$8 sps:$4 sm:$0xff]   ;;  %v897_v19 = vld [vmem:[%s1261_s28 + $0xf4] ss:$8 sps:$4 sm:$0xff]  }
  0x54   : > { %499 = vmatprep.subr.bf16.mxu0 %v879_v4  ;;  %v899_v20 = vld [vmem:[%s1261_s28 + $0xf0] ss:$8 sps:$4 sm:$0xff]   ;;  %v900_v21 = vld [vmem:[%s1261_s28 + $0xe4] ss:$8 sps:$4 sm:$0xff]   ;;  %v902_v22 = vld [vmem:[%s1261_s28 + $0xe0] ss:$8 sps:$4 sm:$0xff]  }
  0x55   : > { %527 = vmatprep.mubr.bf16.mxu0 %v302_v15  ;;  %v903_v23 = vld [vmem:[%s1261_s28 + $0xd4] ss:$8 sps:$4 sm:$0xff]   ;;  %v905_v24 = vld [vmem:[%s1261_s28 + $0xd0] ss:$8 sps:$4 sm:$0xff]   ;;  %v906_v25 = vld [vmem:[%s1261_s28 + $0xc4] ss:$8 sps:$4 sm:$0xff]  }
  0x56   : > { %v908_v26 = vld [vmem:[%s1261_s28 + $0xc0] ss:$8 sps:$4 sm:$0xff]   ;;  %v909_v27 = vld [vmem:[%s1261_s28 + $0xb4] ss:$8 sps:$4 sm:$0xff]   ;;  %v911_v28 = vld [vmem:[%s1261_s28 + $0xb0] ss:$8 sps:$4 sm:$0xff]  }
  0x57   : > { %500 = vmatpush1.bf16.msra.mxu0 %v881_v5  ;;  %v912_v29 = vld [vmem:[%s1261_s28 + $0xa4] ss:$8 sps:$4 sm:$0xff]   ;;  %v914_v30 = vld [vmem:[%s1261_s28 + $0xa0] ss:$8 sps:$4 sm:$0xff]   ;;  %v915_v31 = vld [vmem:[%s1261_s28 + $0x94] ss:$8 sps:$4 sm:$0xff]  }
  0x58   : > { %501 = vmatprep.subr.bf16.mxu0 %v882_v6  ;;  %v917_v32 = vld [vmem:[%s1261_s28 + $0x90] ss:$8 sps:$4 sm:$0xff]   ;;  %v918_v33 = vld [vmem:[%s1261_s28 + $0x84] ss:$8 sps:$4 sm:$0xff]   ;;  %v920_v34 = vld [vmem:[%s1261_s28 + $0x80] ss:$8 sps:$4 sm:$0xff]  }
  0x59   : > { %v299_v36 = vld [vmem:[#allocation3 + $0x10] sm:$0xff]  ;;  %v557_v40 = vsub.s32 0, %v556_v39  ;;  %v561_v41 = vsub.s32 1, %v556_v39  ;;  %v553_v42 = vld [vmem:[%s250_s20] sm:$0x3]  ;;  %s277_s27 = scalar_lea.vmem [#allocation9], %s742_s23 }
  0x5a   : > { %v301_v37 = vpack.c.bf16 %v299_v36, %v297_v35  ;;  %s600_s10 = sshll.u32 %s277_s27, 4  ;;  %s786_s19 = sshll.u32 %s1079_s15, 7  ;;  %s1302_s10 = int_to_ptr.vmem [resolvable:$true] %s600_s10 }
  0x5b   : > { %502 = vmatpush1.bf16.msra.mxu0 %v884_v7  ;;  %v558_v43 = vrot.slane %v553_v42, %v557_v40  ;;  %v562_v44 = vrot.slane %v553_v42, %v561_v41  ;;  %s1307_s8 = scalar_lea.hbm %s1357_s3, %s786_s19  ;;  %s584_s9 = scalar_lea.sflag [#allocation5], %s1258_s7 }
  0x5c   : > { %503 = vmatprep.subr.bf16.mxu0 %v885_v8  ;;  %s1003_s11 = scalar_lea.vmem %s1302_s10, 256  ;;  %p1370_p8 = scmp.ne.s32.totalorder %s1363_s25, 0 }
  0x5d   : > { %p1004_p6 = scmp.ne.s32.totalorder %s1302_s10, %s1003_s11  ;;  %s1097_s15 = smov [#allocation9]  }
  0x5e   : > { %s1007_s21 = sshll.u32 %s1097_s15, 4  ;;  %s1008_s21 = int_to_ptr.vmem [resolvable:$false] %s1007_s21 }
  0x5f   : > { %504 = vmatpush1.bf16.msra.mxu0 %v887_v9  ;;  %p1005_p13 = pnand %p1004_p6, %p1370_p8  ;;  %s1009_s30 = scalar_lea.vmem %s1008_s21, 512 }
  0x60   : > { %505 = vmatprep.subr.bf16.mxu0 %v888_v10  ;;  %p1010_p12 = scmp.lt.s32.totalorder %s1302_s10, %s1008_s21  ;;  %p1011_p0 = scmp.lt.s32.totalorder %s1009_s30, %s1003_s11 }
  0x61   : > { %p1006_p1 = pneg %p1005_p13 }
  0x62   : > { %p1012_p2 = por %p1011_p0, %p1010_p12 }
  0x63   : > { %506 = vmatpush1.bf16.msra.mxu0 %v890_v11 }
  0x64   : > { %507 = vmatprep.subr.bf16.mxu0 %v891_v12  ;;  %p1013_p4 = pnand %p1012_p2, %p1006_p1 }
  0x67   : > { %508 = vmatpush1.bf16.msra.mxu0 %v893_v16 }
  0x68   : > { %509 = vmatprep.subr.bf16.mxu0 %v894_v17 }
  0x6b   : > { %510 = vmatpush1.bf16.msra.mxu0 %v896_v18 }
  0x6c   : > { %511 = vmatprep.subr.bf16.mxu0 %v897_v19 }
  0x6f   : > { %512 = vmatpush2.bf16.msra.mxu0 %v899_v20 }
  0x70   : > { %513 = vmatprep.subr.bf16.mxu0 %v900_v21 }
  0x73   : > { %514 = vmatpush2.bf16.msra.mxu0 %v902_v22 }
  0x74   : > { %515 = vmatprep.subr.bf16.mxu0 %v903_v23 }
  0x77   : > { %516 = vmatpush2.bf16.msra.mxu0 %v905_v24 }
  0x78   : > { %517 = vmatprep.subr.bf16.mxu0 %v906_v25 }
  0x7b   : > { %518 = vmatpush2.bf16.msra.mxu0 %v908_v26 }
  0x7c   : > { %519 = vmatprep.subr.bf16.mxu0 %v909_v27 }
  0x7f   : > { %520 = vmatpush2.bf16.msra.mxu0 %v911_v28 }
  0x80   : > { %521 = vmatprep.subr.bf16.mxu0 %v912_v29 }
  0x83   : > { %522 = vmatpush2.bf16.msra.mxu0 %v914_v30 }
  0x84   : > { %523 = vmatprep.subr.bf16.mxu0 %v915_v31 }
  0x87   : > { %524 = vmatpush2.bf16.msra.mxu0 %v917_v32 }
  0x88   : > { %525 = vmatprep.subr.bf16.mxu0 %v918_v33 }
  0x8b   : > { %526 = vmatpush2.bf16.msra.mxu0 %v920_v34 }
  0x8e   : > { %528 = vmatmul.mubr.bf16.vlgmr.msra.gmra.mxu0 %v301_v37 }
 0x14e   : > { %v529_v45 = vpop.f32.mrf.mxu0 }
 0x14f   : > { %v565_v47 = vadd.f32 %v558_v43, %v529_v45 }
 0x150   : > { %v531_v46 = vpop.f32.mrf.mxu0 }
 0x151   : > { %v566_v48 = vadd.f32 %v562_v44, %v531_v46 }
 0x152   : > { %v533_v49 = vpop.f32.mrf.mxu0 }
 0x153   : > { %v784_v50 = vpack.c.bf16 %v566_v48, %v565_v47  ;;  %v567_v52 = vadd.f32 %v558_v43, %v533_v49 }
 0x154   : > { %v535_v51 = vpop.f32.mrf.mxu0 }
 0x155   : > { %581 = vst [vmem:[%s277_s27] sm:$0xff] %v784_v50  ;;  %v568_v53 = vadd.f32 %v562_v44, %v535_v51 }
 0x157   : > { %v785_v54 = vpack.c.bf16 %v568_v53, %v567_v52 }
 0x159   : > { %582 = vst [vmem:[%s277_s27 + $0x8] sm:$0xff] %v785_v54 }
 0x15a   : > { %1016 = shalt.err (!%p1013_p4)
}
 0x15b   : > { %s1017_s29 = scalar_lea.hbm %s1307_s8, 256  ;;  %s1021_s5 = scalar_lea.hbm %s1357_s3, 768 }
 0x15c   : > { %p1018_p7 = scmp.ne.s32.totalorder %s1307_s8, %s1017_s29  ;;  %p1022_p9 = scmp.lt.s32.totalorder %s1307_s8, %s1357_s3 }
 0x15d   : > { %p1023_p10 = scmp.lt.s32.totalorder %s1021_s5, %s1017_s29 }
 0x15e   : > { %p1019_p3 = pnand %p1018_p7, %p1370_p8 }
 0x15f   : > { %p1024_p11 = por %p1023_p10, %p1022_p9 }
 0x160   : > { %p1020_p5 = pneg %p1019_p3 }
 0x162   : > { %p1025_p6 = pnand %p1024_p11, %p1020_p5 }
 0x164   : > { %1028 = shalt.err (!%p1025_p6)
}
 0x165   : > { %s1098_s27 = smov 128   ;;  %s1099_s19 = smov 384  }
 0x166   : > { %s1100_s6 = smov 8  }
 0x167   : > { %795 = dma.vmem_to_hbm [thread:$0]  (%p1370_p8), %s1302_s10, 256, %s1307_s8, %s584_s9, %s1098_s27, %s1099_s19, %s1100_s6  }
 0x168 PF: > { %p815_p13 = scmp.ge.s32.totalorder %s1087_s17, 2  ;;  %s615_s4 = sand.u32 1, %s1067_s12  }
 0x169   : > { %p1371_p1 = scmp.ne.s32.totalorder %s1364_s26, 0  ;;  %s616_s11 = scalar_lea.sflag [#allocation5], %s615_s4 }
 0x16b   : > { %p809_p12 = pnand %p815_p13, %p1371_p1 }
 0x16d   : > { %p810_p0 = pneg %p809_p12 }
 0x16f   : > { %1062 = dma.done.wait (%p810_p0), %s616_s11, 256  }
 0x170   : > { %1064 = vsyncadd (%p810_p0), %s616_s11, 4294967040  ;;  %s20_s17 = sadd.s32 1, %s1087_s17   ;;  %s1372_s12 = smov %s1071_s13 }
 0x171   : > { %p17_p2 = scmp.ge.s32.totalorder %s20_s17, 5   ;;  %s1373_s13 = smov %s1075_s14 }
 0x172   : > { %s1374_s14 = smov %s1168_s24  ;;  %s1375_s15 = smov %s1083_s16 }
 0x173   : > { %s1376_s16 = smov %s1378_s18  ;;  %19 = sbr.rel (!%p17_p2) target bundleno = 7 (0x7), region = 102 }
 0x178   :  { %621 = vsyncpa [#allocation4], 1 }
 0x179   :  { %623 = vsyncpa [#allocation4 + $0x1], 1 }
 0x17a   :  { %624 = vsyncpa [#allocation7], 1 }
 0x17b   :  { %626 = vsyncpa [#allocation7 + $0x1], 1 }
 0x17c   :  { %627 = vsyncpa [#allocation5], 1 }
 0x17d   :  { %629 = vsyncpa [#allocation5 + $0x1], 1 }

</bundles_post_ra>
